<compile_context>
chip_gen: v5e
topology: v5e:2x2
jax: 0.10.0
libtpu: 0.0.40
codegen_flags: <defaults>
</compile_context>

<pallas_src>
import functools

import jax
import jax.numpy as jnp
from jax.experimental import pallas as pl
from jax.experimental.pallas import tpu as pltpu

EPS = 1e-6
_MAX_TM = 256    # rows ((batch, channel) pairs) per block
_MAX_TS = 2048   # pooled spatial elements per block (multiple of 128)


def _round_up(x, m):
    return ((x + m - 1) // m) * m


def _int_pow(x, n):
    """x**n for a static positive int n using only VPU multiplies (no EUP)."""
    acc = None
    base = x
    while n:
        if n & 1:
            acc = base if acc is None else acc * base
        n >>= 1
        if n:
            base = base * base
    return acc


def _static_int_exponent(p):
    """Return p as a small positive int if statically known (not a tracer), else None."""
    try:
        val = float(jnp.asarray(p).reshape(-1)[0])
    except Exception:
        return None
    r = round(val)
    if abs(val - r) < 1e-12 and 1 <= r <= 16:
        return int(r)
    return None


def _gem_kernel(p_ref, x_ref, o_ref, acc_ref, *, p_int, s_true, ts, need_mask, eps):
    # p_ref: SMEM (1,) float32; x_ref: VMEM (TM, TS); o_ref: VMEM (TM, 1)
    # acc_ref: VMEM (TM, 128) f32 persistent accumulator across the S grid axis.
    k = pl.program_id(1)
    nk = pl.num_programs(1)

    @pl.when(k == 0)
    def _init():
        acc_ref[...] = jnp.zeros_like(acc_ref)

    x = x_ref[...].astype(jnp.float32)
    xc = jnp.maximum(x, eps)  # clamp(min=eps) -> strictly positive

    if p_int is not None:
        # Default / integer p: VPU multiply chain, keeps the EUP free.
        xp = _int_pow(xc, p_int)
    else:
        # Generic non-integer p: exp(p * log(x)) (safe, xc > 0).
        p = p_ref[0]
        xp = jnp.exp(p * jnp.log(xc))

    if need_mask:
        # Zero out columns beyond the true spatial size S (tile/array padding).
        col = jax.lax.broadcasted_iota(jnp.int32, xp.shape, 1) + k * ts
        xp = jnp.where(col < s_true, xp, 0.0)

    # Fold the (TM, TS) tile into (TM, 128): pure elementwise VPU adds, no per-tile
    # cross-lane reduction.
    nchunks = ts // 128
    part = xp[:, 0:128]
    for c in range(1, nchunks):
        part = part + xp[:, c * 128:(c + 1) * 128]
    acc_ref[...] += part

    @pl.when(k == nk - 1)
    def _finalize():
        # Single cross-lane reduce per row block, then mean and 1/p root.
        total = jnp.sum(acc_ref[...], axis=-1, keepdims=True)          # (TM, 1)
        mean = total * (1.0 / s_true)
        if p_int is not None:
            res = jnp.exp(jnp.log(mean) * (1.0 / p_int))
        else:
            res = jnp.exp(jnp.log(mean) / p_ref[0])
        o_ref[...] = res.astype(o_ref.dtype)


def gem(x, p, eps=EPS):
    """GeM pooling. x: (N, C, D, H, W); p: (1,) float parameter.

    Matches F.avg_pool3d(x.clamp(min=eps).pow(p), (D, H, W)).pow(1/p)
    and returns shape (N, C, 1, 1, 1) in x.dtype.
    """
    N, C, D, H, W = x.shape
    rows = N * C
    S = D * H * W

    # Keep the original dtype on the wire (no wrapper up-cast); cast in-kernel.
    x2d = x.reshape(rows, S)
    p_arr = jnp.asarray(p, dtype=jnp.float32).reshape(1)
    p_int = _static_int_exponent(p)

    TM = min(_MAX_TM, _round_up(rows, 8))
    TS = min(_MAX_TS, _round_up(S, 128))
    num_k = pl.cdiv(S, TS)
    grid = (pl.cdiv(rows, TM), num_k)
    need_mask = (S % TS) != 0

    kernel = functools.partial(
        _gem_kernel, p_int=p_int, s_true=S, ts=TS, need_mask=need_mask, eps=eps
    )

    out2d = pl.pallas_call(
        kernel,
        out_shape=jax.ShapeDtypeStruct((rows, 1), x.dtype),
        grid=grid,
        in_specs=[
            pl.BlockSpec(memory_space=pltpu.SMEM),             # p (scalar param)
            pl.BlockSpec((TM, TS), lambda i, k: (i, k)),       # x tile
        ],
        out_specs=pl.BlockSpec((TM, 1), lambda i, k: (i, 0)),  # resident across k
        scratch_shapes=[pltpu.VMEM((TM, 128), jnp.float32)],
        compiler_params=pltpu.CompilerParams(
            dimension_semantics=("parallel", "arbitrary"),
            vmem_limit_bytes=32 * 1024 * 1024,
        ),
    )(p_arr, x2d)

    return out2d.reshape(N, C, 1, 1, 1)


def _ref_gem(x, p_val, eps=EPS):
    return jnp.mean(jnp.maximum(x, eps) ** p_val, axis=(2, 3, 4), keepdims=True) ** (1.0 / p_val)


if __name__ == "__main__":
    key = jax.random.PRNGKey(0)

    # Small NCDHW input consistent with avg_pool3d over the last three dims.
    N, C, D, H, W = 2, 4, 4, 8, 8
    x = jax.random.uniform(key, (N, C, D, H, W), dtype=jnp.float32)

    # Default parameter init: nn.Parameter(torch.ones(1) * 3)  -> integer fast path.
    p3 = jnp.ones((1,), dtype=jnp.float32) * 3.0
    out3 = gem(x, p3)
    jax.block_until_ready(out3)
    assert out3.shape == (N, C, 1, 1, 1)
    assert jnp.allclose(out3, _ref_gem(x, 3.0), rtol=1e-5, atol=1e-6)

    # Non-integer p -> generic exp/log path.
    p25 = jnp.asarray([2.5], dtype=jnp.float32)
    out25 = gem(x, p25)
    jax.block_until_ready(out25)
    assert jnp.allclose(out25, _ref_gem(x, 2.5), rtol=1e-5, atol=1e-6)

    # Non-128-multiple spatial size -> exercises the column mask path.
    x_odd = jax.random.uniform(jax.random.PRNGKey(1), (2, 4, 3, 5, 7), dtype=jnp.float32)
    out_odd = gem(x_odd, p3)
    jax.block_until_ready(out_odd)
    assert jnp.allclose(out_odd, _ref_gem(x_odd, 3.0), rtol=1e-5, atol=1e-6)

    # Spatial size > one tile -> exercises multi-step accumulation over the S axis.
    x_big = jax.random.uniform(jax.random.PRNGKey(2), (2, 4, 4, 32, 32), dtype=jnp.float32)
    out_big = gem(x_big, p3)
    jax.block_until_ready(out_big)
    assert jnp.allclose(out_big, _ref_gem(x_big, 3.0), rtol=1e-5, atol=1e-6)

    print("KERNEL_OK")
</pallas_src>

<mosaic_0001>
module attributes {stable_mosaic.version = 11 : i64} {
  func.func @_gem_kernel(%arg0: i32, %arg1: i32, %arg2: memref<1xf32, #tpu.memory_space<smem>>, %arg3: memref<8x256xf32, #tpu.memory_space<vmem>>, %arg4: memref<8x1xf32, #tpu.memory_space<vmem>>, %arg5: memref<8x128xf32, #tpu.memory_space<vmem>>) attributes {dimension_semantics = [#tpu.dimension_semantics<parallel>, #tpu.dimension_semantics<arbitrary>], iteration_bounds = array<i64: 1, 1>, scalar_prefetch = 0 : i64, scratch_operands = 1 : i64, tpu.core_type = #tpu.core_type<tc>, window_params = [{transform_indices = @transform_0, window_bounds = array<i64: 1>}, {transform_indices = @transform_1, window_bounds = array<i64: 8, 256>}, {transform_indices = @transform_2, window_bounds = array<i64: 8, 1>}]} {
    %c0_i32 = arith.constant 0 : i32
    %0 = arith.cmpi eq, %arg1, %c0_i32 : i32
    %1 = arith.extui %0 : i1 to i32
    %c0_i32_0 = arith.constant 0 : i32
    %2 = arith.cmpi ne, %1, %c0_i32_0 : i32
    scf.if %2 {
      %cst_8 = arith.constant 0.000000e+00 : f32
      %17 = vector.broadcast %cst_8 : f32 to vector<8x128xf32>
      %c0_9 = arith.constant 0 : index
      %c0_10 = arith.constant 0 : index
      %18 = vector.load %arg5[%c0_9, %c0_10] : memref<8x128xf32, #tpu.memory_space<vmem>>, vector<8x128xf32>
      tpu.vector_store %arg5[%c0_9, %c0_10], %17 {strides = array<i32>} : memref<8x128xf32, #tpu.memory_space<vmem>>, vector<8x128xf32>,
    } else {
    }
    %c0 = arith.constant 0 : index
    %c0_1 = arith.constant 0 : index
    %3 = vector.load %arg3[%c0, %c0_1] : memref<8x256xf32, #tpu.memory_space<vmem>>, vector<8x256xf32>
    %cst = arith.constant 9.99999997E-7 : f32
    %4 = vector.broadcast %cst : f32 to vector<8x256xf32>
    %5 = arith.maximumf %3, %4 : vector<8x256xf32>
    %6 = arith.mulf %5, %5 : vector<8x256xf32>
    %7 = arith.mulf %5, %6 : vector<8x256xf32>
    %8 = vector.extract_strided_slice %7 {offsets = [0, 0], sizes = [8, 128], strides = [1, 1]} : vector<8x256xf32> to vector<8x128xf32>
    %9 = vector.extract_strided_slice %7 {offsets = [0, 128], sizes = [8, 128], strides = [1, 1]} : vector<8x256xf32> to vector<8x128xf32>
    %10 = arith.addf %8, %9 : vector<8x128xf32>
    %c0_2 = arith.constant 0 : index
    %c0_3 = arith.constant 0 : index
    %11 = vector.load %arg5[%c0_2, %c0_3] : memref<8x128xf32, #tpu.memory_space<vmem>>, vector<8x128xf32>
    %12 = arith.addf %11, %10 : vector<8x128xf32>
    %c0_4 = arith.constant 0 : index
    %c0_5 = arith.constant 0 : index
    %13 = vector.load %arg5[%c0_4, %c0_5] : memref<8x128xf32, #tpu.memory_space<vmem>>, vector<8x128xf32>
    tpu.vector_store %arg5[%c0_4, %c0_5], %12 {strides = array<i32>} : memref<8x128xf32, #tpu.memory_space<vmem>>, vector<8x128xf32>,
    %c0_i32_6 = arith.constant 0 : i32
    %14 = arith.cmpi eq, %arg1, %c0_i32_6 : i32
    %15 = arith.extui %14 : i1 to i32
    %c0_i32_7 = arith.constant 0 : i32
    %16 = arith.cmpi ne, %15, %c0_i32_7 : i32
    scf.if %16 {
      %c0_8 = arith.constant 0 : index
      %c0_9 = arith.constant 0 : index
      %17 = vector.load %arg5[%c0_8, %c0_9] : memref<8x128xf32, #tpu.memory_space<vmem>>, vector<8x128xf32>
      %cst_10 = arith.constant dense<0.000000e+00> : vector<8xf32>
      %18 = vector.multi_reduction <add>, %17, %cst_10 [1] : vector<8x128xf32> to vector<8xf32>
      %19 = vector.shape_cast %18 : vector<8xf32> to vector<8x1xf32>
      %cst_11 = arith.constant 3.906250e-03 : f32
      %20 = vector.broadcast %cst_11 : f32 to vector<8x1xf32>
      %21 = arith.mulf %19, %20 : vector<8x1xf32>
      %22 = math.log %21 : vector<8x1xf32>
      %cst_12 = arith.constant 0.333333343 : f32
      %23 = vector.broadcast %cst_12 : f32 to vector<8x1xf32>
      %24 = arith.mulf %22, %23 : vector<8x1xf32>
      %25 = math.exp %24 : vector<8x1xf32>
      %c0_13 = arith.constant 0 : index
      %c0_14 = arith.constant 0 : index
      %26 = vector.load %arg4[%c0_13, %c0_14] : memref<8x1xf32, #tpu.memory_space<vmem>>, vector<8x1xf32>
      tpu.vector_store %arg4[%c0_13, %c0_14], %25 {strides = array<i32>} : memref<8x1xf32, #tpu.memory_space<vmem>>, vector<8x1xf32>,
    } else {
    }
    return
  }
  func.func @transform_0(%arg0: i32, %arg1: i32) -> i32 {
    %c0_i32 = arith.constant 0 : i32
    %c0_i32_0 = arith.constant 0 : i32
    return %c0_i32 : i32
  }
  func.func @transform_1(%arg0: i32, %arg1: i32) -> (i32, i32) {
    %c0_i32 = arith.constant 0 : i32
    return %arg0, %arg1 : i32, i32
  }
  func.func @transform_2(%arg0: i32, %arg1: i32) -> (i32, i32) {
    %c0_i32 = arith.constant 0 : i32
    %c0_i32_0 = arith.constant 0 : i32
    return %arg0, %c0_i32 : i32, i32
  }
}

</mosaic_0001>

<bundles_post_ra>
// kernel: tpu_custom_call.1
= control target key start
LH: loop header
LB: loop body
LE: loop exit
PB: predicated region body
PF: predicated region fallthrough
CT: control target
= control target key end

     0   :  { %8 = vsyncpa [#allocation5], 0  ;;  %s93_s12 = smov [#allocation4]   ;;  %s115_s0 = inlined_call_operand.<no memory space> [shape: f32[1], index: 0, kind: input, shape index: {}]   ;;  %s116_s1 = inlined_call_operand.hbm [shape: f32[8,256], index: 1, kind: input, shape index: {}]   ;;  %s117_s2 = inlined_call_operand.vmem [shape: f32[8,1], index: 2, kind: output, shape index: {}]  }
   0x1   :  { %s16_s11 = sshll.u32 %s116_s1, 4  ;;  %s18_s13 = sshll.u32 %s93_s12, 4  ;;  %s17_s11 = int_to_ptr.hbm [resolvable:$true] %s16_s11  ;;  %s19_s13 = int_to_ptr.vmem [resolvable:$true] %s18_s13 }
   0x2   :  { %21 = dma.hbm_to_vmem [thread:$0]  %s17_s11, 256, %s19_s13, [#allocation5]  }
   0x3   :  { %91 = dma.done.wait [#allocation5], 256  }
   0x4   :  { %92 = vsyncadd [#allocation5], 4294967040  ;;  %v31_v0 = vld [vmem:[#allocation4] sm:$0xff]  ;;  %v32_v1 = vld [vmem:[#allocation4 + $0x8] sm:$0xff]  ;;  %vm55_vm0 = vcmask 7168  }
   0x5   :  { %v33_v2 = vmax.f32 %v31_v0, 1e-06  ;;  %v34_v3 = vmax.f32 %v32_v1, 1e-06 }
   0x7   :  { %v35_v4 = vmul.f32 %v33_v2, %v33_v2  ;;  %v36_v5 = vmul.f32 %v34_v3, %v34_v3 }
   0x9   :  { %v37_v6 = vmul.f32 %v35_v4, %v33_v2  ;;  %v38_v7 = vmul.f32 %v36_v5, %v34_v3 }
   0xb   :  { %v39_v8 = vadd.f32 %v38_v7, %v37_v6 }
   0xd   :  { %47 = vadd.xlane.f32.xlu0 %v39_v8 }
  0x80   :  { %v48_v9 = vpop.xlane.xlu0 %47 }
  0x81   :  { %v49_v10 = vmul.f32 0.00390625, %v48_v9 }
  0x83   :  { %63 = vlog2.f32 %v49_v10 }
  0x89   :  { %v64_v11 = vpop.eup %63 }
  0x8a   :  { %v51_v12 = vmul.f32 0.6931472, %v64_v11 }
  0x8c   :  { %v52_v13 = vmul.f32 0.33333334, %v51_v12 }
  0x8e   :  { %v53_v14 = vmul.f32 1.442695, %v52_v13 }
  0x90   :  { %65 = vpow2.f32 %v53_v14 }
  0x96   :  { %v66_v15 = vpop.eup %65 }
  0x97   :  { %56 = vst.msk [vmem:[%s117_s2] sm:$0xff] %vm55_vm0, %v66_v15 }
  0x98   :  { %61 = vsyncpa [#allocation5], 1 }

</bundles_post_ra>
